<compile_context>
chip_gen: v5e
topology: v5e:2x2
jax: 0.10.0
libtpu: 0.0.40
codegen_flags: <defaults>
</compile_context>

<pallas_src>
import jax
import jax.numpy as jnp
from jax.experimental import pallas as pl
from jax.experimental.pallas import tpu as pltpu


def _round_up(x, m):
    return (x + m - 1) // m * m


def _make_kernel(ip):
    """ip = padded intermediate width (static), used to split the fused matmul."""

    def quantum_ffn_kernel(qscal_ref,          # SMEM  [1]          |amplitude| * cos(phase)
                           x_ref,              # VMEM  [tm, Hp]     bf16 activation tile
                           wf_ref, bf_ref,     # VMEM  [Hp, Ip+Hp] bf16, [1, Ip+Hp] f32  ([w1|wq], [b1|bq])
                           w2_ref, b2_ref,     # VMEM  [Ip, Hp]    bf16, [1, Hp]     f32
                           gate_ref,           # VMEM  [1, Hp]     f32 (quantum_gate param)
                           o_ref):             # VMEM  [tm, Hp]    f32
        x = x_ref[...]

        # Fused up-projection: x @ [w1 | wq]  (single MXU pass over the shared LHS).
        xw = jnp.dot(x, wf_ref[...], preferred_element_type=jnp.float32) + bf_ref[...]

        # original_ffn: GELU -> down projection (f32 activation math, bf16 MXU inputs).
        # TODO(synk): PyTorch nn.GELU defaults to the exact erf form; tanh approx used here.
        h = jax.nn.gelu(xw[:, :ip], approximate=True)
        orig = (jnp.dot(h.astype(jnp.bfloat16), w2_ref[...],
                        preferred_element_type=jnp.float32) + b2_ref[...])

        # Quantum branch: proj * |amp| * Re(exp(i*phase)) * sigmoid(gate),
        # reassociated so the per-row work is a single broadcast multiply-add.
        qp = xw[:, ip:]
        gmul = jax.nn.sigmoid(gate_ref[...]) * qscal_ref[0]        # [1, Hp]
        o_ref[...] = orig + qp * gmul

    return quantum_ffn_kernel


def quantum_enhanced_ffn(hidden_states, params, amplitude, phase, *, tm_max=256):
    """hidden_states: [B, S, H] float32; amplitude: complex scalar; phase: float scalar."""
    B, S, H = hidden_states.shape
    I = params["w1"].shape[1]
    M = B * S

    f32, bf16 = jnp.float32, jnp.bfloat16

    # Lane-dense padding: last dims -> multiples of 128; M tile -> multiple of 8.
    Hp = _round_up(H, 128)
    Ip = _round_up(I, 128)
    tm = min(tm_max, _round_up(M, 8))
    Mp = _round_up(M, tm)
    grid_m = Mp // tm

    def pad2(a, r, c):
        return jnp.pad(a, ((0, r - a.shape[0]), (0, c - a.shape[1])))

    # Activations: [Mp, Hp] bf16 (streamed).
    x2d = hidden_states.reshape(M, H).astype(f32)
    xp = pad2(x2d, Mp, Hp).astype(bf16)

    # Fused RHS [Hp, Ip+Hp] = [w1 | wq] in bf16; fused bias [1, Ip+Hp] in f32.
    wf = jnp.concatenate([pad2(params["w1"].astype(f32), Hp, Ip),
                          pad2(params["wq"].astype(f32), Hp, Hp)], axis=1).astype(bf16)
    bf = jnp.concatenate([pad2(params["b1"].astype(f32), 1, Ip),
                          pad2(params["bq"].astype(f32), 1, Hp)], axis=1)
    w2 = pad2(params["w2"].astype(f32), Ip, Hp).astype(bf16)
    b2 = pad2(params["b2"].astype(f32), 1, Hp)
    gate = pad2(params["gate"].astype(f32), 1, Hp)

    # Scalar "quantum state" glue: |amplitude| * Re(exp(i*phase)) = |amplitude| * cos(phase).
    qscal = (jnp.abs(amplitude).astype(f32) * jnp.cos(jnp.asarray(phase, f32))).reshape(1)

    def resident(shape):
        return pl.BlockSpec(shape, lambda i: (0, 0))

    grid_spec = pltpu.PrefetchScalarGridSpec(
        num_scalar_prefetch=0,
        grid=(grid_m,),
        in_specs=[
            pl.BlockSpec(memory_space=pltpu.MemorySpace.SMEM),   # qscal scalar
            pl.BlockSpec((tm, Hp), lambda i: (i, 0)),            # x tile (streamed over M)
            resident((Hp, Ip + Hp)),                             # fused [w1 | wq] (VMEM-resident)
            resident((1, Ip + Hp)),                              # fused [b1 | bq]
            resident((Ip, Hp)),                                  # w2
            resident((1, Hp)),                                   # b2
            resident((1, Hp)),                                   # quantum_gate
        ],
        out_specs=pl.BlockSpec((tm, Hp), lambda i: (i, 0)),
    )

    flops = 2 * Mp * Hp * (Ip + Hp) + 2 * Mp * Ip * Hp
    bytes_accessed = (xp.size * 2 + wf.size * 2 + w2.size * 2
                      + (bf.size + b2.size + gate.size) * 4 + Mp * Hp * 4)
    cost = pl.CostEstimate(flops=int(flops),
                           transcendentals=int(Mp * Ip + grid_m * Hp),
                           bytes_accessed=int(bytes_accessed))

    out = pl.pallas_call(
        _make_kernel(Ip),
        out_shape=jax.ShapeDtypeStruct((Mp, Hp), f32),
        grid_spec=grid_spec,
        compiler_params=pltpu.CompilerParams(
            # M axis is embarrassingly parallel -> megacore sharding on v7x.
            dimension_semantics=("parallel",),
        ),
        cost_estimate=cost,
    )(qscal, xp, wf, bf, w2, b2, gate)

    return out[:M, :H].reshape(B, S, H)


def init_params(key, hidden_dim, intermediate_dim):
    ks = jax.random.split(key, 7)
    s_h = 1.0 / jnp.sqrt(hidden_dim)
    s_i = 1.0 / jnp.sqrt(intermediate_dim)
    return {
        # original_ffn (Linear H->I, Linear I->H), weights stored [in, out]
        "w1": jax.random.uniform(ks[0], (hidden_dim, intermediate_dim), jnp.float32, -s_h, s_h),
        "b1": jax.random.uniform(ks[1], (1, intermediate_dim), jnp.float32, -s_h, s_h),
        "w2": jax.random.uniform(ks[2], (intermediate_dim, hidden_dim), jnp.float32, -s_i, s_i),
        "b2": jax.random.uniform(ks[3], (1, hidden_dim), jnp.float32, -s_i, s_i),
        # quantum_proj Linear H->H
        "wq": jax.random.uniform(ks[4], (hidden_dim, hidden_dim), jnp.float32, -s_h, s_h),
        "bq": jax.random.uniform(ks[5], (1, hidden_dim), jnp.float32, -s_h, s_h),
        # quantum_gate ~ torch.randn(hidden_dim)
        "gate": jax.random.normal(ks[6], (1, hidden_dim), jnp.float32),
    }


def reference_forward(hidden_states, params, amplitude, phase):
    """Pure-JAX (f32) reference matching the kernel semantics."""
    x = hidden_states.astype(jnp.float32)
    h = jax.nn.gelu(x @ params["w1"] + params["b1"], approximate=True)
    orig = h @ params["w2"] + params["b2"]
    qp = x @ params["wq"] + params["bq"]
    gate = jax.nn.sigmoid(params["gate"])
    scale = jnp.abs(amplitude) * jnp.real(jnp.exp(1j * phase))
    return orig + qp * scale.astype(jnp.float32) * gate


if __name__ == "__main__":
    B, S, H, I = 2, 8, 32, 64

    key = jax.random.PRNGKey(0)
    k_params, k_x = jax.random.split(key)

    params = init_params(k_params, H, I)
    hidden_states = jax.random.normal(k_x, (B, S, H), jnp.float32)

    # deterministic synthetic QuantumState
    amplitude = jnp.complex64(0.8 + 0.3j)
    phase = jnp.float32(0.7)

    out = quantum_enhanced_ffn(hidden_states, params, amplitude, phase)
    out = jax.block_until_ready(out)

    ref = reference_forward(hidden_states, params, amplitude, phase)
    assert out.shape == (B, S, H)
    # bf16 MXU inputs with f32 accumulation vs full-f32 reference -> loose tolerance.
    assert jnp.allclose(out, ref, atol=5e-2, rtol=5e-2), "kernel mismatch vs reference"

    print("KERNEL_OK")
</pallas_src>

<mosaic_0001>
module attributes {stable_mosaic.version = 11 : i64} {
  func.func @quantum_ffn_kernel(%arg0: i32, %arg1: memref<1xf32, #tpu.memory_space<smem>>, %arg2: memref<16x128xbf16, #tpu.memory_space<vmem>>, %arg3: memref<128x256xbf16, #tpu.memory_space<vmem>>, %arg4: memref<1x256xf32, #tpu.memory_space<vmem>>, %arg5: memref<128x128xbf16, #tpu.memory_space<vmem>>, %arg6: memref<1x128xf32, #tpu.memory_space<vmem>>, %arg7: memref<1x128xf32, #tpu.memory_space<vmem>>, %arg8: memref<16x128xf32, #tpu.memory_space<vmem>>) attributes {dimension_semantics = [#tpu.dimension_semantics<parallel>], iteration_bounds = array<i64: 1>, scalar_prefetch = 0 : i64, scratch_operands = 0 : i64, tpu.core_type = #tpu.core_type<tc>, window_params = [{transform_indices = @transform_0, window_bounds = array<i64: 1>}, {transform_indices = @transform_1, window_bounds = array<i64: 16, 128>}, {pipeline_mode = #tpu.pipeline_mode<synchronous>, transform_indices = @transform_2, window_bounds = array<i64: 128, 256>}, {pipeline_mode = #tpu.pipeline_mode<synchronous>, transform_indices = @transform_3, window_bounds = array<i64: 1, 256>}, {pipeline_mode = #tpu.pipeline_mode<synchronous>, transform_indices = @transform_4, window_bounds = array<i64: 128, 128>}, {pipeline_mode = #tpu.pipeline_mode<synchronous>, transform_indices = @transform_5, window_bounds = array<i64: 1, 128>}, {pipeline_mode = #tpu.pipeline_mode<synchronous>, transform_indices = @transform_6, window_bounds = array<i64: 1, 128>}, {transform_indices = @transform_7, window_bounds = array<i64: 16, 128>}]} {
    %c0 = arith.constant 0 : index
    %c0_0 = arith.constant 0 : index
    %0 = vector.load %arg2[%c0, %c0_0] : memref<16x128xbf16, #tpu.memory_space<vmem>>, vector<16x128xbf16>
    %c0_1 = arith.constant 0 : index
    %c0_2 = arith.constant 0 : index
    %1 = vector.load %arg3[%c0_1, %c0_2] : memref<128x256xbf16, #tpu.memory_space<vmem>>, vector<128x256xbf16>
    %cst = arith.constant dense<0.000000e+00> : vector<16x256xf32>
    %2 = tpu.matmul %0, %1, %cst {dimension_numbers = #tpu.dot_dimension_numbers<[1], [0], [0], [1], [0, 0, 1, 1], [], []>} : vector<16x128xbf16>, vector<128x256xbf16>, vector<16x256xf32> -> vector<16x256xf32>
    %c0_3 = arith.constant 0 : index
    %c0_4 = arith.constant 0 : index
    %3 = vector.load %arg4[%c0_3, %c0_4] : memref<1x256xf32, #tpu.memory_space<vmem>>, vector<1x256xf32>
    %4 = vector.broadcast %3 : vector<1x256xf32> to vector<16x256xf32>
    %5 = arith.addf %2, %4 : vector<16x256xf32>
    %6 = vector.extract_strided_slice %5 {offsets = [0, 0], sizes = [16, 128], strides = [1, 1]} : vector<16x256xf32> to vector<16x128xf32>
    %7 = arith.mulf %6, %6 : vector<16x128xf32>
    %8 = arith.mulf %6, %7 : vector<16x128xf32>
    %cst_5 = arith.constant 4.471500e-02 : f32
    %9 = vector.broadcast %cst_5 : f32 to vector<16x128xf32>
    %10 = arith.mulf %9, %8 : vector<16x128xf32>
    %11 = arith.addf %6, %10 : vector<16x128xf32>
    %cst_6 = arith.constant 0.797884583 : f32
    %12 = vector.broadcast %cst_6 : f32 to vector<16x128xf32>
    %13 = arith.mulf %12, %11 : vector<16x128xf32>
    %14 = math.tanh %13 : vector<16x128xf32>
    %cst_7 = arith.constant 1.000000e+00 : f32
    %15 = vector.broadcast %cst_7 : f32 to vector<16x128xf32>
    %16 = arith.addf %15, %14 : vector<16x128xf32>
    %cst_8 = arith.constant 5.000000e-01 : f32
    %17 = vector.broadcast %cst_8 : f32 to vector<16x128xf32>
    %18 = arith.mulf %17, %16 : vector<16x128xf32>
    %19 = arith.mulf %6, %18 : vector<16x128xf32>
    %20 = arith.truncf %19 : vector<16x128xf32> to vector<16x128xbf16>
    %c0_9 = arith.constant 0 : index
    %c0_10 = arith.constant 0 : index
    %21 = vector.load %arg5[%c0_9, %c0_10] : memref<128x128xbf16, #tpu.memory_space<vmem>>, vector<128x128xbf16>
    %cst_11 = arith.constant dense<0.000000e+00> : vector<16x128xf32>
    %22 = tpu.matmul %20, %21, %cst_11 {dimension_numbers = #tpu.dot_dimension_numbers<[1], [0], [0], [1], [0, 0, 1, 1], [], []>} : vector<16x128xbf16>, vector<128x128xbf16>, vector<16x128xf32> -> vector<16x128xf32>
    %c0_12 = arith.constant 0 : index
    %c0_13 = arith.constant 0 : index
    %23 = vector.load %arg6[%c0_12, %c0_13] : memref<1x128xf32, #tpu.memory_space<vmem>>, vector<1x128xf32>
    %24 = vector.broadcast %23 : vector<1x128xf32> to vector<16x128xf32>
    %25 = arith.addf %22, %24 : vector<16x128xf32>
    %26 = vector.extract_strided_slice %5 {offsets = [0, 128], sizes = [16, 128], strides = [1, 1]} : vector<16x256xf32> to vector<16x128xf32>
    %c0_14 = arith.constant 0 : index
    %c0_15 = arith.constant 0 : index
    %27 = vector.load %arg7[%c0_14, %c0_15] : memref<1x128xf32, #tpu.memory_space<vmem>>, vector<1x128xf32>
    %28 = arith.negf %27 : vector<1x128xf32>
    %29 = math.exp %28 : vector<1x128xf32>
    %cst_16 = arith.constant 1.000000e+00 : f32
    %30 = vector.broadcast %cst_16 : f32 to vector<1x128xf32>
    %31 = arith.addf %30, %29 : vector<1x128xf32>
    %32 = arith.divf %30, %31 : vector<1x128xf32>
    %c0_17 = arith.constant 0 : index
    %33 = memref.load %arg1[%c0_17] : memref<1xf32, #tpu.memory_space<smem>>
    %34 = vector.broadcast %33 : f32 to vector<1x128xf32>
    %35 = arith.mulf %32, %34 : vector<1x128xf32>
    %36 = vector.broadcast %35 : vector<1x128xf32> to vector<16x128xf32>
    %37 = arith.mulf %26, %36 : vector<16x128xf32>
    %38 = arith.addf %25, %37 : vector<16x128xf32>
    %c0_18 = arith.constant 0 : index
    %c0_19 = arith.constant 0 : index
    %39 = vector.load %arg8[%c0_18, %c0_19] : memref<16x128xf32, #tpu.memory_space<vmem>>, vector<16x128xf32>
    tpu.vector_store %arg8[%c0_18, %c0_19], %38 {strides = array<i32>} : memref<16x128xf32, #tpu.memory_space<vmem>>, vector<16x128xf32>,
    return
  }
  func.func @transform_0(%arg0: i32) -> i32 {
    %c0_i32 = arith.constant 0 : i32
    %c0_i32_0 = arith.constant 0 : i32
    return %c0_i32 : i32
  }
  func.func @transform_1(%arg0: i32) -> (i32, i32) {
    %c0_i32 = arith.constant 0 : i32
    %c0_i32_0 = arith.constant 0 : i32
    return %arg0, %c0_i32 : i32, i32
  }
  func.func @transform_2(%arg0: i32) -> (i32, i32) {
    %c0_i32 = arith.constant 0 : i32
    %c0_i32_0 = arith.constant 0 : i32
    %c0_i32_1 = arith.constant 0 : i32
    return %c0_i32, %c0_i32_0 : i32, i32
  }
  func.func @transform_3(%arg0: i32) -> (i32, i32) {
    %c0_i32 = arith.constant 0 : i32
    %c0_i32_0 = arith.constant 0 : i32
    %c0_i32_1 = arith.constant 0 : i32
    return %c0_i32, %c0_i32_0 : i32, i32
  }
  func.func @transform_4(%arg0: i32) -> (i32, i32) {
    %c0_i32 = arith.constant 0 : i32
    %c0_i32_0 = arith.constant 0 : i32
    %c0_i32_1 = arith.constant 0 : i32
    return %c0_i32, %c0_i32_0 : i32, i32
  }
  func.func @transform_5(%arg0: i32) -> (i32, i32) {
    %c0_i32 = arith.constant 0 : i32
    %c0_i32_0 = arith.constant 0 : i32
    %c0_i32_1 = arith.constant 0 : i32
    return %c0_i32, %c0_i32_0 : i32, i32
  }
  func.func @transform_6(%arg0: i32) -> (i32, i32) {
    %c0_i32 = arith.constant 0 : i32
    %c0_i32_0 = arith.constant 0 : i32
    %c0_i32_1 = arith.constant 0 : i32
    return %c0_i32, %c0_i32_0 : i32, i32
  }
  func.func @transform_7(%arg0: i32) -> (i32, i32) {
    %c0_i32 = arith.constant 0 : i32
    %c0_i32_0 = arith.constant 0 : i32
    return %arg0, %c0_i32 : i32, i32
  }
}

</mosaic_0001>

<bundles_post_ra>
// kernel: tpu_custom_call.1
= control target key start
LH: loop header
LB: loop body
LE: loop exit
PB: predicated region body
PF: predicated region fallthrough
CT: control target
= control target key end

     0   :  { %13 = vsyncpa [#allocation4], 0  ;;  %s693_s0 = inlined_call_operand.<no memory space> [shape: f32[1], index: 0, kind: input, shape index: {}]   ;;  %s694_s1 = inlined_call_operand.hbm [shape: bf16[16,128], index: 1, kind: input, shape index: {}]   ;;  %s695_s2 = inlined_call_operand.hbm [shape: bf16[128,256], index: 2, kind: input, shape index: {}]   ;;  %s696_s3 = inlined_call_operand.vmem [shape: f32[1,256], index: 3, kind: input, shape index: {}]   ;;  %s697_s4 = inlined_call_operand.hbm [shape: bf16[128,128], index: 4, kind: input, shape index: {}]   ;;  %s698_s5 = inlined_call_operand.vmem [shape: f32[1,128], index: 5, kind: input, shape index: {}]   ;;  %s699_s6 = inlined_call_operand.vmem [shape: f32[1,128], index: 6, kind: input, shape index: {}]   ;;  %s700_s7 = inlined_call_operand.hbm [shape: f32[16,128], index: 7, kind: output, shape index: {}]  }
   0x1   :  { %14 = vsyncpa [#allocation7], 0  ;;  %s35_s26 = sshll.u32 %s695_s2, 4  ;;  %s36_s26 = int_to_ptr.hbm [resolvable:$true] %s35_s26 }
   0x2   :  { %15 = vsyncpa [#allocation5], 0  ;;  %s611_s27 = smov [#allocation6]   ;;  %s22_s8 = sshll.u32 %s694_s1, 4  ;;  %s23_s8 = int_to_ptr.hbm [resolvable:$true] %s22_s8 }
   0x3   :  { %s37_s28 = sshll.u32 %s611_s27, 4  ;;  %s612_s9 = smov 128   ;;  %s38_s28 = int_to_ptr.vmem [resolvable:$true] %s37_s28 }
   0x4   :  { %s613_s10 = smov 8   ;;  %s614_s11 = smov [#allocation3]  }
   0x5   :  { %43 = dma.hbm_to_vmem [thread:$0]  %s36_s26, 2048, %s38_s28, [#allocation7], %s612_s9, %s612_s9, %s613_s10  }
   0x6   :  { %s24_s12 = sshll.u32 %s614_s11, 4  ;;  %s615_s2 = smov 64   ;;  %s25_s12 = int_to_ptr.vmem [resolvable:$true] %s24_s12 }
   0x7   :  { %s616_s13 = smov 4   ;;  %s50_s16 = sshll.u32 %s697_s4, 4  ;;  %s51_s16 = int_to_ptr.hbm [resolvable:$true] %s50_s16 }
   0x8   :  { %30 = dma.hbm_to_vmem [thread:$0]  %s23_s8, 128, %s25_s12, [#allocation4], %s615_s2, %s615_s2, %s616_s13  }
   0x9   :  { %s617_s17 = smov [#allocation8]  }
   0xa   :  { %s52_s1 = sshll.u32 %s617_s17, 4  ;;  %s53_s1 = int_to_ptr.vmem [resolvable:$true] %s52_s1 }
   0xb   :  { %58 = dma.hbm_to_vmem [thread:$0]  %s51_s16, 1024, %s53_s1, [#allocation7], %s615_s2, %s615_s2, %s616_s13  }
   0xc   :  { %605 = dma.done.wait [#allocation4], 128  }
   0xd   :  { %606 = vsyncadd [#allocation4], 4294967168 }
   0xe   :  { %607 = dma.done.wait [#allocation7], 3072  }
   0xf   :  { %608 = vsyncadd [#allocation7], 4294964224  ;;  %v428_v0 = vld [vmem:[#allocation6 + $0x70] sm:$0xf]  ;;  %v483_v1 = vld [vmem:[#allocation6 + $0x74] sm:$0xf0] }
  0x10   :  { %v420_v2 = vld [vmem:[#allocation6 + $0x60] sm:$0xf]  ;;  %v429_v3 = vor.u32 %v483_v1, %v428_v0  ;;  %v481_v4 = vld [vmem:[#allocation6 + $0x64] sm:$0xf0]  ;;  %v412_v6 = vld [vmem:[#allocation6 + $0x50] sm:$0xf] }
  0x11   :  { %v421_v5 = vor.u32 %v481_v4, %v420_v2  ;;  %v479_v7 = vld [vmem:[#allocation6 + $0x54] sm:$0xf0]  ;;  %v404_v9 = vld [vmem:[#allocation6 + $0x40] sm:$0xf]  ;;  %v477_v10 = vld [vmem:[#allocation6 + $0x44] sm:$0xf0] }
  0x12   :  { %185 = vmatpush.bf16.msra.mxu0 %v429_v3  ;;  %v413_v8 = vor.u32 %v479_v7, %v412_v6  ;;  %v405_v11 = vor.u32 %v477_v10, %v404_v9  ;;  %v396_v12 = vld [vmem:[#allocation6 + $0x30] sm:$0xf]  ;;  %v475_v13 = vld [vmem:[#allocation6 + $0x34] sm:$0xf0]  ;;  %v388_v15 = vld [vmem:[#allocation6 + $0x20] sm:$0xf] }
  0x13   :  { %v397_v14 = vor.u32 %v475_v13, %v396_v12  ;;  %v473_v16 = vld [vmem:[#allocation6 + $0x24] sm:$0xf0]  ;;  %v380_v18 = vld [vmem:[#allocation6 + $0x10] sm:$0xf]  ;;  %v471_v19 = vld [vmem:[#allocation6 + $0x14] sm:$0xf0] }
  0x14   :  { %v389_v17 = vor.u32 %v473_v16, %v388_v15  ;;  %v381_v20 = vor.u32 %v471_v19, %v380_v18  ;;  %v372_v21 = vld [vmem:[#allocation6] sm:$0xf]  ;;  %v469_v22 = vld [vmem:[#allocation6 + $0x4] sm:$0xf0]  ;;  %v467_v24 = vld [vmem:[#allocation3] sm:$0xff]  ;;  %s618_s23 = smov [#allocation9]  }
  0x15   :  { %v373_v23 = vor.u32 %v469_v22, %v372_v21  ;;  %v482_v25 = vld [vmem:[#allocation6 + $0x74] sm:$0xf]  ;;  %v430_v26 = vld [vmem:[#allocation6 + $0x78] sm:$0xf0]  ;;  %v480_v28 = vld [vmem:[#allocation6 + $0x64] sm:$0xf] }
  0x16   :  { %186 = vmatpush.bf16.msra.mxu0 %v421_v5  ;;  %v433_v27 = vor.u32 %v482_v25, %v430_v26  ;;  %v422_v29 = vld [vmem:[#allocation6 + $0x68] sm:$0xf0]  ;;  %v491_v31 = vld [vmem:[#allocation8 + $0x38] sm:$0xff]  ;;  %v478_v32 = vld [vmem:[#allocation6 + $0x54] sm:$0xf]  ;;  %s352_s26 = sshll.u32 %s700_s7, 4  ;;  %s353_s26 = int_to_ptr.hbm [resolvable:$true] %s352_s26 }
  0x17   :  { %v425_v30 = vor.u32 %v480_v28, %v422_v29  ;;  %300 = vmatpush.bf16.msra.mxu2 %v491_v31  ;;  %v414_v33 = vld [vmem:[#allocation6 + $0x58] sm:$0xf0]  ;;  %v490_v35 = vld [vmem:[#allocation8 + $0x30] sm:$0xff]  ;;  %v476_v36 = vld [vmem:[#allocation6 + $0x44] sm:$0xf] }
  0x18   :  { %199 = vmatpush.bf16.msra.mxu1 %v433_v27  ;;  %v417_v34 = vor.u32 %v478_v32, %v414_v33  ;;  %v406_v37 = vld [vmem:[#allocation6 + $0x48] sm:$0xf0]  ;;  %v474_v40 = vld [vmem:[#allocation6 + $0x34] sm:$0xf]  ;;  %v398_v41 = vld [vmem:[#allocation6 + $0x38] sm:$0xf0]  ;;  %v335_v32 = vstv %s693_s0 }
  0x19   :  { %v409_v38 = vor.u32 %v476_v36, %v406_v37  ;;  %v489_v39 = vld [vmem:[#allocation8 + $0x28] sm:$0xff]  ;;  %v401_v42 = vor.u32 %v474_v40, %v398_v41  ;;  %v488_v43 = vld [vmem:[#allocation8 + $0x20] sm:$0xff]  ;;  %v487_v46 = vld [vmem:[#allocation8 + $0x18] sm:$0xff]  ;;  %s350_s0 = sshll.u32 %s618_s23, 4  ;;  %s351_s0 = int_to_ptr.vmem [resolvable:$true] %s350_s0 }
  0x1a   :  { %187 = vmatpush.bf16.msra.mxu0 %v413_v8  ;;  %v472_v44 = vld [vmem:[#allocation6 + $0x24] sm:$0xf]  ;;  %v390_v45 = vld [vmem:[#allocation6 + $0x28] sm:$0xf0]  ;;  %v470_v48 = vld [vmem:[#allocation6 + $0x14] sm:$0xf] }
  0x1b   :  { %301 = vmatpush.bf16.msra.mxu2 %v490_v35  ;;  %v393_v47 = vor.u32 %v472_v44, %v390_v45  ;;  %v382_v49 = vld [vmem:[#allocation6 + $0x18] sm:$0xf0]  ;;  %v486_v51 = vld [vmem:[#allocation8 + $0x10] sm:$0xff]  ;;  %v468_v52 = vld [vmem:[#allocation6 + $0x4] sm:$0xf] }
  0x1c   :  { %200 = vmatpush.bf16.msra.mxu1 %v425_v30  ;;  %v385_v50 = vor.u32 %v470_v48, %v382_v49  ;;  %v374_v53 = vld [vmem:[#allocation6 + $0x8] sm:$0xf0]  ;;  %v674_v56 = vld [vmem:[%s696_s3] sm:$0x3]  ;;  %v484_v58 = vld [vmem:[#allocation8] sm:$0xff] }
  0x1d   :  { %v377_v54 = vor.u32 %v468_v52, %v374_v53  ;;  %v485_v55 = vld [vmem:[#allocation8 + $0x8] sm:$0xff]  ;;  %v95_v57 = vperm.slane %v674_v56, 0  ;;  %v314_v18 = vld [vmem:[%s699_s6] sm:$0x1]  ;;  %v96_v33 = vperm.slane %v674_v56, 1 }
  0x1e   :  { %188 = vmatpush.bf16.msra.mxu0 %v405_v11  ;;  %v466_v19 = vmul.f32 -1.442695, %v314_v18 }
  0x1f   :  { %302 = vmatpush.bf16.msra.mxu2 %v489_v39 }
  0x20   :  { %201 = vmatpush.bf16.msra.mxu1 %v417_v34 }
  0x22   :  { %189 = vmatpush.bf16.msra.mxu0 %v397_v14 }
  0x23   :  { %303 = vmatpush.bf16.msra.mxu2 %v488_v43 }
  0x24   :  { %202 = vmatpush.bf16.msra.mxu1 %v409_v38  ;;  %v500_v38 = vld [vmem:[%s698_s5] ss:$0 sm:$0xff] }
  0x26   :  { %190 = vmatpush.bf16.msra.mxu0 %v389_v17 }
  0x27   :  { %304 = vmatpush.bf16.msra.mxu2 %v487_v46 }
  0x28   :  { %203 = vmatpush.bf16.msra.mxu1 %v401_v42 }
  0x2a   :  { %191 = vmatpush.bf16.msra.mxu0 %v381_v20 }
  0x2b   :  { %305 = vmatpush.bf16.msra.mxu2 %v486_v51 }
  0x2c   :  { %204 = vmatpush.bf16.msra.mxu1 %v393_v47 }
  0x2e   :  { %192 = vmatpush.bf16.msra.mxu0 %v373_v23 }
  0x2f   :  { %306 = vmatpush.bf16.msra.mxu2 %v485_v55 }
  0x30   :  { %205 = vmatpush.bf16.msra.mxu1 %v385_v50 }
  0x31   :  { %193 = vmatmul.bf16.vlgmr.msra.gmra.mxu0 %v467_v24 }
  0x33   :  { %307 = vmatpush.bf16.msra.mxu2 %v484_v58 }
  0x34   :  { %206 = vmatpush.bf16.msra.mxu1 %v377_v54 }
  0x37   :  { %207 = vmatmul.bf16.vlgmr.msra.gmra.mxu1 %v467_v24 }
  0xae   :  { %v194_v59 = vpop.f32.mrf.mxu0 }
  0xaf   :  { %v195_v60 = vadd.f32 %v194_v59, %v95_v57 }
  0xb1   :  { %v213_v61 = vmul.f32 %v195_v60, %v195_v60 }
  0xb3   :  { %v215_v62 = vmul.f32 %v213_v61, %v195_v60 }
  0xb4   :  { %v208_v35 = vpop.f32.mrf.mxu1 }
  0xb5   :  { %v217_v63 = vmul.f32 0.044715, %v215_v62  ;;  %v209_v36 = vadd.f32 %v208_v35, %v96_v33 }
  0xb6   :  { %v196_v0 = vpop.f32.mrf.mxu0 }
  0xb7   :  { %v219_v1 = vadd.f32 %v217_v63, %v195_v60  ;;  %v197_v2 = vadd.f32 %v196_v0, %v95_v57 }
  0xb9   :  { %v214_v3 = vmul.f32 %v197_v2, %v197_v2  ;;  %v221_v4 = vmul.f32 0.7978846, %v219_v1 }
  0xbb   :  { %v216_v5 = vmul.f32 %v214_v3, %v197_v2  ;;  %501 = vtanh.f32 %v221_v4 }
  0xbc   :  { %v210_v42 = vpop.f32.mrf.mxu1 }
  0xbd   :  { %v218_v6 = vmul.f32 0.044715, %v216_v5  ;;  %v211_v44 = vadd.f32 %v210_v42, %v96_v33 }
  0xbf   :  { %v220_v7 = vadd.f32 %v218_v6, %v197_v2 }
  0xc1   :  { %v222_v8 = vmul.f32 0.7978846, %v220_v7  ;;  %v502_v9 = vpop.eup %501 }
  0xc2   :  { %v225_v10 = vadd.f32 1.0, %v502_v9 }
  0xc3   :  { %503 = vtanh.f32 %v222_v8 }
  0xc4   :  { %v227_v13 = vmul.f32 0.5, %v225_v10  ;;  %505 = vpow2.f32 %v466_v19 }
  0xc6   :  { %v229_v15 = vmul.f32 %v227_v13, %v195_v60 }
  0xc9   :  { %v504_v11 = vpop.eup %503 }
  0xca   :  { %v226_v12 = vadd.f32 1.0, %v504_v11  ;;  %v506_v20 = vpop.eup %505 }
  0xcb   :  { %v318_v21 = vadd.f32 1.0, %v506_v20 }
  0xcc   :  { %v228_v14 = vmul.f32 0.5, %v226_v12 }
  0xcd   :  { %507 = vrcp.f32 %v318_v21  ;;  %vm324_vm0 = vweird.f32 %v318_v21  ;;  %v330_v26 = vand.u32 2147483648, %v318_v21  ;;  %v328_v28 = vand.u32 2147483647, %v318_v21 }
  0xce   :  { %v230_v16 = vmul.f32 %v228_v14, %v197_v2 }
  0xcf   :  { %v331_v29 = vor.u32 1.1754944e-38, %v330_v26  ;;  %vm329_vm3 = vcmp.eq.f32.partialorder %v328_v28, 8.507059e+37 }
  0xd0   :  { %v231_v17 = vpack.c.bf16 %v230_v16, %v229_v15 }
  0xd2   :  { %308 = vmatmul.bf16.vlgmr.msra.gmra.mxu2 %v231_v17 }
  0xd3   :  { %v508_v22 = vpop.eup %507 }
  0xd4   :  { %v320_v23 = vmul.f32 %v508_v22, %v318_v21  ;;  %vm325_vm1 = vweird.f32 %v508_v22 }
  0xd5   :  { %vm326_vm2 = vmor %vm324_vm0, %vm325_vm1 }
  0xd6   :  { %v321_v24 = vsub.f32 1.0, %v320_v23 }
  0xd8   :  { %v322_v25 = vmul.f32 %v508_v22, %v321_v24 }
  0xda   :  { %v323_v27 = vadd.f32 %v508_v22, %v322_v25 }
  0xdc   :  { %v327_v30 = vsel %vm326_vm2, %v508_v22, %v323_v27 }
  0xdd   :  { %v332_v31 = vsel %vm329_vm3, %v331_v29, %v327_v30 }
  0xde   :  { %v336_v34 = vmul.f32 %v335_v32, %v332_v31 }
  0xe0   :  { %v338_v37 = vperm.slane %v336_v34, 0 }
  0xe2   :  { %v340_v39 = vmul.f32 %v338_v37, %v209_v36  ;;  %v341_v46 = vmul.f32 %v338_v37, %v211_v44 }
 0x155   :  { %v309_v40 = vpop.f32.mrf.mxu2 }
 0x156   :  { %v310_v41 = vadd.f32 %v500_v38, %v309_v40 }
 0x158   :  { %v342_v43 = vadd.f32 %v340_v39, %v310_v41 }
 0x15a   :  { %344 = vst [vmem:[#allocation9] sm:$0xff] %v342_v43 }
 0x15d   :  { %v311_v45 = vpop.f32.mrf.mxu2 }
 0x15e   :  { %v312_v47 = vadd.f32 %v500_v38, %v311_v45 }
 0x160   :  { %v343_v48 = vadd.f32 %v341_v46, %v312_v47 }
 0x162   :  { %345 = vst [vmem:[#allocation9 + $0x8] sm:$0xff] %v343_v48 }
 0x163   :  { %358 = dma.vmem_to_hbm [thread:$0]  %s351_s0, 256, %s353_s26, [#allocation5], %s612_s9, %s612_s9, %s613_s10  }
 0x164   :  { %609 = dma.done.wait [#allocation5], 256  }
 0x165   :  { %610 = vsyncadd [#allocation5], 4294967040 }
 0x166   :  { %363 = vsyncpa [#allocation4], 1 }
 0x167   :  { %364 = vsyncpa [#allocation7], 1 }
 0x168   :  { %365 = vsyncpa [#allocation5], 1 }

</bundles_post_ra>
